<compile_context>
chip_gen: v5e
topology: v5e:2x2
jax: 0.10.0
libtpu: 0.0.40
codegen_flags: <defaults>
</compile_context>

<pallas_src>
import functools

import jax
import jax.numpy as jnp
from jax.experimental import pallas as pl
from jax.experimental.pallas import tpu as pltpu


def _polynomial_penalty_kernel(nv_ref, xy_ref, out_ref, *, power: int):
    n = power + 1                           # number of polynomial coefficients
    b_pad = xy_ref.shape[1]

    y = xy_ref[0:1, :]                      # cx -> regression target, [1, B_pad]
    x = xy_ref[1:2, :]                      # cy -> regression input,  [1, B_pad]

    nv = nv_ref[0]                                          # valid boxes (int32)
    nv_f = jnp.broadcast_to(nv, (1, 1)).astype(jnp.float32)  # [1, 1]
    inv_nv = pl.reciprocal(nv_f, approx=True)                 # EUP slot
    inv_nv = inv_nv * (2.0 - nv_f * inv_nv)                   # 1 NR -> ~f32 exact

    lane = jax.lax.broadcasted_iota(jnp.int32, (1, b_pad), 1)
    mask = (lane < nv).astype(jnp.float32)                    # [1, B_pad]

    # --- centre & scale x (affine-invariant for the fitted y_hat) -----------
    mean_x = jnp.sum(x, axis=1, keepdims=True) * inv_nv       # [1, 1]
    xc = (x - mean_x) * mask                                   # padded lanes -> 0
    var_x = jnp.sum(xc * xc, axis=1, keepdims=True) * inv_nv   # [1, 1]
    t = xc * jax.lax.rsqrt(var_x + 1e-12)                      # standardized x

    # --- moments / RHS with one MXU matmul ----------------------------------
    # M rows: [t^0(masked), t^1, ..., t^power, y, 0-pad...]  -> [8, B_pad]
    rows = [mask, t]
    tp = t
    for _ in range(2, power + 1):
        tp = tp * t
        rows.append(tp)
    rows.append(y)                                            # padded lanes are 0
    rows += [jnp.zeros_like(mask)] * (8 - len(rows))
    m_mat = jnp.concatenate(rows, axis=0)                     # [8, B_pad]

    # G[i, j] = sum_b M[i, b] * M[j, b]   (contract lane axis of both operands)
    gram = jax.lax.dot_general(
        m_mat, m_mat, (((1,), (1,)), ((), ())),
        preferred_element_type=jnp.float32)                   # [8, 8]

    # Augmented system: A = gram[:n, :n], rhs q_i = gram[i, n].
    rid = jax.lax.broadcasted_iota(jnp.int32, (8, 8), 0)
    cid = jax.lax.broadcasted_iota(jnp.int32, (8, 8), 1)
    ridx = jax.lax.broadcasted_iota(jnp.int32, (8, 1), 0)
    ridge = nv_f * 1e-6                                       # rank-deficiency guard
    aug = gram + jnp.where(rid == cid, ridge, 0.0)

    # --- vectorized Gauss-Jordan (A is SPD after centring + ridge) -----------
    for k in range(n):
        piv = aug[k:k + 1, k:k + 1]                           # [1, 1]
        inv = pl.reciprocal(piv, approx=True)                 # EUP slot
        inv = inv * (2.0 - piv * inv)                         # one NR refinement
        row_k = aug[k:k + 1, :] * inv                         # normalized pivot row
        col_k = jnp.where(ridx == k, 0.0, aug[:, k:k + 1])    # zero factor at pivot row
        aug = aug - col_k * row_k                             # rank-1 eliminate (VPU)
        aug = jnp.where(rid == k, row_k, aug)                 # write back pivot row

    coeffs = [aug[i:i + 1, n:n + 1] for i in range(n)]        # [1, 1] each

    # --- y_hat via Horner (in the t domain), residual, mean ------------------
    y_hat = coeffs[power]
    for i in range(power - 1, -1, -1):
        y_hat = y_hat * t + coeffs[i]
    resid = jnp.abs(y_hat - y) * mask                         # padded lanes -> 0
    out_ref[...] = jnp.sum(resid, keepdims=True) * inv_nv


def polynomial_penalty(points: jax.Array, power: int = 3) -> jax.Array:
    """points: [B, 4] boxes (cx, cy, w, h). Returns a scalar float32 loss."""
    assert power + 2 <= 8, "power must be <= 6 (M packs into 8 sublanes)"
    B = points.shape[0]
    assert B >= 1
    pts = points.astype(jnp.float32)

    # Lane-dense layout: row 0 = cx (= y), row 1 = cy (= x); w, h never DMA'd.
    # TODO(synk): have the producer emit points already as [2, B] row-major to
    # avoid this HBM->HBM transpose for very large B.
    xy = jnp.stack([pts[:, 0], pts[:, 1]], axis=0)            # [2, B]
    b_pad = max(128, ((B + 127) // 128) * 128)
    if b_pad != B:
        xy = jnp.pad(xy, ((0, 0), (0, b_pad - B)))            # zero-pad box lanes

    nvalid = jnp.full((1,), B, dtype=jnp.int32)               # runtime scalar

    out = pl.pallas_call(
        functools.partial(_polynomial_penalty_kernel, power=power),
        out_shape=jax.ShapeDtypeStruct((1, 1), jnp.float32),
        in_specs=[
            pl.BlockSpec(memory_space=pltpu.MemorySpace.SMEM),  # num_valid scalar
            pl.BlockSpec((2, b_pad), lambda: (0, 0)),           # xy tile (VMEM)
        ],
        out_specs=pl.BlockSpec((1, 1), lambda: (0, 0)),
    )(nvalid, xy)
    return out[0, 0]


def _reference(points: jax.Array, power: int = 3) -> jax.Array:
    """Pure-JAX reference mirroring the PyTorch module."""
    cx, cy = points[:, 0], points[:, 1]
    x, y = cy, cx
    poly = jnp.stack([x ** i for i in range(power + 1)], axis=-1)
    coeffs, *_ = jnp.linalg.lstsq(poly, y)
    y_hat = poly @ coeffs
    return jnp.mean(jnp.abs(y_hat - y))


if __name__ == "__main__":
    key = jax.random.PRNGKey(0)

    # Primary small test: B=8 boxes of (cx, cy, w, h).
    points = jax.random.normal(key, (8, 4), dtype=jnp.float32)
    loss = polynomial_penalty(points, power=3)
    jax.block_until_ready(loss)
    ref = _reference(points, power=3)
    assert jnp.allclose(loss, ref, rtol=1e-3, atol=1e-3), (loss, ref)

    # Non-multiple-of-128 B exercises the lane mask / runtime num_valid scalar.
    points2 = jax.random.normal(jax.random.PRNGKey(1), (37, 4), dtype=jnp.float32)
    loss2 = polynomial_penalty(points2, power=3)
    jax.block_until_ready(loss2)
    ref2 = _reference(points2, power=3)
    assert jnp.allclose(loss2, ref2, rtol=1e-3, atol=1e-3), (loss2, ref2)

    # Larger-magnitude coordinates exercise the in-kernel centring / scaling.
    points3 = jax.random.normal(jax.random.PRNGKey(2), (45, 4), dtype=jnp.float32)
    points3 = points3 * jnp.array([10.0, 5.0, 1.0, 1.0], dtype=jnp.float32)
    loss3 = polynomial_penalty(points3, power=3)
    jax.block_until_ready(loss3)
    ref3 = _reference(points3, power=3)
    assert jnp.allclose(loss3, ref3, rtol=1e-3, atol=1e-3), (loss3, ref3)

    print("KERNEL_OK")
</pallas_src>

<mosaic_0001>
module attributes {stable_mosaic.version = 11 : i64} {
  func.func @_polynomial_penalty_kernel(%arg0: memref<1xi32, #tpu.memory_space<smem>>, %arg1: memref<2x128xf32, #tpu.memory_space<vmem>>, %arg2: memref<1x1xf32, #tpu.memory_space<vmem>>) attributes {dimension_semantics = [], scalar_prefetch = 0 : i64, scratch_operands = 0 : i64, tpu.core_type = #tpu.core_type<tc>} {
    %c0 = arith.constant 0 : index
    %c0_0 = arith.constant 0 : index
    %0 = vector.load %arg1[%c0, %c0_0] : memref<2x128xf32, #tpu.memory_space<vmem>>, vector<1x128xf32>
    %c1 = arith.constant 1 : index
    %c0_1 = arith.constant 0 : index
    %1 = vector.load %arg1[%c1, %c0_1] : memref<2x128xf32, #tpu.memory_space<vmem>>, vector<1x128xf32>
    %c0_2 = arith.constant 0 : index
    %2 = memref.load %arg0[%c0_2] : memref<1xi32, #tpu.memory_space<smem>>
    %3 = vector.broadcast %2 : i32 to vector<1x1xi32>
    %4 = arith.sitofp %3 : vector<1x1xi32> to vector<1x1xf32>
    %5 = tpu.reciprocal %4 {approx = true} : vector<1x1xf32> -> vector<1x1xf32>
    %6 = arith.mulf %4, %5 : vector<1x1xf32>
    %cst = arith.constant 2.000000e+00 : f32
    %7 = vector.broadcast %cst : f32 to vector<1x1xf32>
    %8 = arith.subf %7, %6 : vector<1x1xf32>
    %9 = arith.mulf %5, %8 : vector<1x1xf32>
    %10 = tpu.iota {dimensions = array<i32: 1>} : vector<1x128xi32>
    %11 = vector.broadcast %2 : i32 to vector<1x128xi32>
    %12 = arith.cmpi slt, %10, %11 : vector<1x128xi32>
    %13 = arith.extui %12 : vector<1x128xi1> to vector<1x128xi32>
    %14 = arith.sitofp %13 : vector<1x128xi32> to vector<1x128xf32>
    %cst_3 = arith.constant dense<0.000000e+00> : vector<1xf32>
    %15 = vector.multi_reduction <add>, %1, %cst_3 [1] : vector<1x128xf32> to vector<1xf32>
    %16 = vector.shape_cast %15 : vector<1xf32> to vector<1x1xf32>
    %17 = arith.mulf %16, %9 : vector<1x1xf32>
    %18 = vector.broadcast %17 : vector<1x1xf32> to vector<1x128xf32>
    %19 = arith.subf %1, %18 : vector<1x128xf32>
    %20 = arith.mulf %19, %14 : vector<1x128xf32>
    %21 = arith.mulf %20, %20 : vector<1x128xf32>
    %cst_4 = arith.constant dense<0.000000e+00> : vector<1xf32>
    %22 = vector.multi_reduction <add>, %21, %cst_4 [1] : vector<1x128xf32> to vector<1xf32>
    %23 = vector.shape_cast %22 : vector<1xf32> to vector<1x1xf32>
    %24 = arith.mulf %23, %9 : vector<1x1xf32>
    %cst_5 = arith.constant 9.99999996E-13 : f32
    %25 = vector.broadcast %cst_5 : f32 to vector<1x1xf32>
    %26 = arith.addf %24, %25 : vector<1x1xf32>
    %27 = math.rsqrt %26 : vector<1x1xf32>
    %28 = vector.broadcast %27 : vector<1x1xf32> to vector<1x128xf32>
    %29 = arith.mulf %20, %28 : vector<1x128xf32>
    %30 = arith.mulf %29, %29 : vector<1x128xf32>
    %31 = arith.mulf %30, %29 : vector<1x128xf32>
    %cst_6 = arith.constant 0.000000e+00 : f32
    %32 = vector.broadcast %cst_6 : f32 to vector<1x128xf32>
    %33 = tpu.concatenate %14, %29, %30, %31, %0, %32, %32, %32 in 0 : vector<1x128xf32>, vector<1x128xf32>, vector<1x128xf32>, vector<1x128xf32>, vector<1x128xf32>, vector<1x128xf32>, vector<1x128xf32>, vector<1x128xf32> -> vector<8x128xf32>
    %cst_7 = arith.constant dense<0.000000e+00> : vector<8x8xf32>
    %34 = tpu.matmul %33, %33, %cst_7 {dimension_numbers = #tpu.dot_dimension_numbers<[1], [1], [0], [0], [0, 0, 1, 0], [], []>} : vector<8x128xf32>, vector<8x128xf32>, vector<8x8xf32> -> vector<8x8xf32>
    %35 = tpu.iota {dimensions = array<i32: 0>} : vector<8x8xi32>
    %36 = tpu.iota {dimensions = array<i32: 1>} : vector<8x8xi32>
    %37 = tpu.iota {dimensions = array<i32: 0>} : vector<8x1xi32>
    %cst_8 = arith.constant 9.99999997E-7 : f32
    %38 = vector.broadcast %cst_8 : f32 to vector<1x1xf32>
    %39 = arith.mulf %4, %38 : vector<1x1xf32>
    %40 = arith.cmpi eq, %35, %36 : vector<8x8xi32>
    %cst_9 = arith.constant 0.000000e+00 : f32
    %41 = vector.shape_cast %39 : vector<1x1xf32> to vector<1x1xf32>
    %42 = vector.broadcast %41 : vector<1x1xf32> to vector<8x8xf32>
    %43 = vector.broadcast %cst_9 : f32 to vector<8x8xf32>
    %44 = arith.select %40, %42, %43 : vector<8x8xi1>, vector<8x8xf32>
    %45 = arith.addf %34, %44 : vector<8x8xf32>
    %46 = vector.extract_strided_slice %45 {offsets = [0, 0], sizes = [1, 1], strides = [1, 1]} : vector<8x8xf32> to vector<1x1xf32>
    %47 = tpu.reciprocal %46 {approx = true} : vector<1x1xf32> -> vector<1x1xf32>
    %48 = arith.mulf %46, %47 : vector<1x1xf32>
    %cst_10 = arith.constant 2.000000e+00 : f32
    %49 = vector.broadcast %cst_10 : f32 to vector<1x1xf32>
    %50 = arith.subf %49, %48 : vector<1x1xf32>
    %51 = arith.mulf %47, %50 : vector<1x1xf32>
    %52 = vector.extract_strided_slice %45 {offsets = [0, 0], sizes = [1, 8], strides = [1, 1]} : vector<8x8xf32> to vector<1x8xf32>
    %53 = vector.broadcast %51 : vector<1x1xf32> to vector<1x8xf32>
    %54 = arith.mulf %52, %53 : vector<1x8xf32>
    %c0_i32 = arith.constant 0 : i32
    %55 = vector.broadcast %c0_i32 : i32 to vector<8x1xi32>
    %56 = arith.cmpi eq, %37, %55 : vector<8x1xi32>
    %57 = vector.extract_strided_slice %45 {offsets = [0, 0], sizes = [8, 1], strides = [1, 1]} : vector<8x8xf32> to vector<8x1xf32>
    %cst_11 = arith.constant 0.000000e+00 : f32
    %58 = vector.broadcast %cst_11 : f32 to vector<8x1xf32>
    %59 = arith.select %56, %58, %57 : vector<8x1xi1>, vector<8x1xf32>
    %60 = vector.broadcast %59 : vector<8x1xf32> to vector<8x8xf32>
    %61 = vector.broadcast %54 : vector<1x8xf32> to vector<8x8xf32>
    %62 = arith.mulf %60, %61 : vector<8x8xf32>
    %63 = arith.subf %45, %62 : vector<8x8xf32>
    %c0_i32_12 = arith.constant 0 : i32
    %64 = vector.broadcast %c0_i32_12 : i32 to vector<8x8xi32>
    %65 = arith.cmpi eq, %35, %64 : vector<8x8xi32>
    %66 = vector.shape_cast %54 : vector<1x8xf32> to vector<1x8xf32>
    %67 = vector.broadcast %66 : vector<1x8xf32> to vector<8x8xf32>
    %68 = arith.select %65, %67, %63 : vector<8x8xi1>, vector<8x8xf32>
    %69 = vector.extract_strided_slice %68 {offsets = [1, 1], sizes = [1, 1], strides = [1, 1]} : vector<8x8xf32> to vector<1x1xf32>
    %70 = tpu.reciprocal %69 {approx = true} : vector<1x1xf32> -> vector<1x1xf32>
    %71 = arith.mulf %69, %70 : vector<1x1xf32>
    %cst_13 = arith.constant 2.000000e+00 : f32
    %72 = vector.broadcast %cst_13 : f32 to vector<1x1xf32>
    %73 = arith.subf %72, %71 : vector<1x1xf32>
    %74 = arith.mulf %70, %73 : vector<1x1xf32>
    %75 = vector.extract_strided_slice %68 {offsets = [1, 0], sizes = [1, 8], strides = [1, 1]} : vector<8x8xf32> to vector<1x8xf32>
    %76 = vector.broadcast %74 : vector<1x1xf32> to vector<1x8xf32>
    %77 = arith.mulf %75, %76 : vector<1x8xf32>
    %c1_i32 = arith.constant 1 : i32
    %78 = vector.broadcast %c1_i32 : i32 to vector<8x1xi32>
    %79 = arith.cmpi eq, %37, %78 : vector<8x1xi32>
    %80 = vector.extract_strided_slice %68 {offsets = [0, 1], sizes = [8, 1], strides = [1, 1]} : vector<8x8xf32> to vector<8x1xf32>
    %cst_14 = arith.constant 0.000000e+00 : f32
    %81 = vector.broadcast %cst_14 : f32 to vector<8x1xf32>
    %82 = arith.select %79, %81, %80 : vector<8x1xi1>, vector<8x1xf32>
    %83 = vector.broadcast %82 : vector<8x1xf32> to vector<8x8xf32>
    %84 = vector.broadcast %77 : vector<1x8xf32> to vector<8x8xf32>
    %85 = arith.mulf %83, %84 : vector<8x8xf32>
    %86 = arith.subf %68, %85 : vector<8x8xf32>
    %c1_i32_15 = arith.constant 1 : i32
    %87 = vector.broadcast %c1_i32_15 : i32 to vector<8x8xi32>
    %88 = arith.cmpi eq, %35, %87 : vector<8x8xi32>
    %89 = vector.shape_cast %77 : vector<1x8xf32> to vector<1x8xf32>
    %90 = vector.broadcast %89 : vector<1x8xf32> to vector<8x8xf32>
    %91 = arith.select %88, %90, %86 : vector<8x8xi1>, vector<8x8xf32>
    %92 = vector.extract_strided_slice %91 {offsets = [2, 2], sizes = [1, 1], strides = [1, 1]} : vector<8x8xf32> to vector<1x1xf32>
    %93 = tpu.reciprocal %92 {approx = true} : vector<1x1xf32> -> vector<1x1xf32>
    %94 = arith.mulf %92, %93 : vector<1x1xf32>
    %cst_16 = arith.constant 2.000000e+00 : f32
    %95 = vector.broadcast %cst_16 : f32 to vector<1x1xf32>
    %96 = arith.subf %95, %94 : vector<1x1xf32>
    %97 = arith.mulf %93, %96 : vector<1x1xf32>
    %98 = vector.extract_strided_slice %91 {offsets = [2, 0], sizes = [1, 8], strides = [1, 1]} : vector<8x8xf32> to vector<1x8xf32>
    %99 = vector.broadcast %97 : vector<1x1xf32> to vector<1x8xf32>
    %100 = arith.mulf %98, %99 : vector<1x8xf32>
    %c2_i32 = arith.constant 2 : i32
    %101 = vector.broadcast %c2_i32 : i32 to vector<8x1xi32>
    %102 = arith.cmpi eq, %37, %101 : vector<8x1xi32>
    %103 = vector.extract_strided_slice %91 {offsets = [0, 2], sizes = [8, 1], strides = [1, 1]} : vector<8x8xf32> to vector<8x1xf32>
    %cst_17 = arith.constant 0.000000e+00 : f32
    %104 = vector.broadcast %cst_17 : f32 to vector<8x1xf32>
    %105 = arith.select %102, %104, %103 : vector<8x1xi1>, vector<8x1xf32>
    %106 = vector.broadcast %105 : vector<8x1xf32> to vector<8x8xf32>
    %107 = vector.broadcast %100 : vector<1x8xf32> to vector<8x8xf32>
    %108 = arith.mulf %106, %107 : vector<8x8xf32>
    %109 = arith.subf %91, %108 : vector<8x8xf32>
    %c2_i32_18 = arith.constant 2 : i32
    %110 = vector.broadcast %c2_i32_18 : i32 to vector<8x8xi32>
    %111 = arith.cmpi eq, %35, %110 : vector<8x8xi32>
    %112 = vector.shape_cast %100 : vector<1x8xf32> to vector<1x8xf32>
    %113 = vector.broadcast %112 : vector<1x8xf32> to vector<8x8xf32>
    %114 = arith.select %111, %113, %109 : vector<8x8xi1>, vector<8x8xf32>
    %115 = vector.extract_strided_slice %114 {offsets = [3, 3], sizes = [1, 1], strides = [1, 1]} : vector<8x8xf32> to vector<1x1xf32>
    %116 = tpu.reciprocal %115 {approx = true} : vector<1x1xf32> -> vector<1x1xf32>
    %117 = arith.mulf %115, %116 : vector<1x1xf32>
    %cst_19 = arith.constant 2.000000e+00 : f32
    %118 = vector.broadcast %cst_19 : f32 to vector<1x1xf32>
    %119 = arith.subf %118, %117 : vector<1x1xf32>
    %120 = arith.mulf %116, %119 : vector<1x1xf32>
    %121 = vector.extract_strided_slice %114 {offsets = [3, 0], sizes = [1, 8], strides = [1, 1]} : vector<8x8xf32> to vector<1x8xf32>
    %122 = vector.broadcast %120 : vector<1x1xf32> to vector<1x8xf32>
    %123 = arith.mulf %121, %122 : vector<1x8xf32>
    %c3_i32 = arith.constant 3 : i32
    %124 = vector.broadcast %c3_i32 : i32 to vector<8x1xi32>
    %125 = arith.cmpi eq, %37, %124 : vector<8x1xi32>
    %126 = vector.extract_strided_slice %114 {offsets = [0, 3], sizes = [8, 1], strides = [1, 1]} : vector<8x8xf32> to vector<8x1xf32>
    %cst_20 = arith.constant 0.000000e+00 : f32
    %127 = vector.broadcast %cst_20 : f32 to vector<8x1xf32>
    %128 = arith.select %125, %127, %126 : vector<8x1xi1>, vector<8x1xf32>
    %129 = vector.broadcast %128 : vector<8x1xf32> to vector<8x8xf32>
    %130 = vector.broadcast %123 : vector<1x8xf32> to vector<8x8xf32>
    %131 = arith.mulf %129, %130 : vector<8x8xf32>
    %132 = arith.subf %114, %131 : vector<8x8xf32>
    %c3_i32_21 = arith.constant 3 : i32
    %133 = vector.broadcast %c3_i32_21 : i32 to vector<8x8xi32>
    %134 = arith.cmpi eq, %35, %133 : vector<8x8xi32>
    %135 = vector.shape_cast %123 : vector<1x8xf32> to vector<1x8xf32>
    %136 = vector.broadcast %135 : vector<1x8xf32> to vector<8x8xf32>
    %137 = arith.select %134, %136, %132 : vector<8x8xi1>, vector<8x8xf32>
    %138 = vector.extract_strided_slice %137 {offsets = [0, 4], sizes = [1, 1], strides = [1, 1]} : vector<8x8xf32> to vector<1x1xf32>
    %139 = vector.extract_strided_slice %137 {offsets = [1, 4], sizes = [1, 1], strides = [1, 1]} : vector<8x8xf32> to vector<1x1xf32>
    %140 = vector.extract_strided_slice %137 {offsets = [2, 4], sizes = [1, 1], strides = [1, 1]} : vector<8x8xf32> to vector<1x1xf32>
    %141 = vector.extract_strided_slice %137 {offsets = [3, 4], sizes = [1, 1], strides = [1, 1]} : vector<8x8xf32> to vector<1x1xf32>
    %142 = vector.broadcast %141 : vector<1x1xf32> to vector<1x128xf32>
    %143 = arith.mulf %142, %29 : vector<1x128xf32>
    %144 = vector.broadcast %140 : vector<1x1xf32> to vector<1x128xf32>
    %145 = arith.addf %143, %144 : vector<1x128xf32>
    %146 = arith.mulf %145, %29 : vector<1x128xf32>
    %147 = vector.broadcast %139 : vector<1x1xf32> to vector<1x128xf32>
    %148 = arith.addf %146, %147 : vector<1x128xf32>
    %149 = arith.mulf %148, %29 : vector<1x128xf32>
    %150 = vector.broadcast %138 : vector<1x1xf32> to vector<1x128xf32>
    %151 = arith.addf %149, %150 : vector<1x128xf32>
    %152 = arith.subf %151, %0 : vector<1x128xf32>
    %153 = math.absf %152 : vector<1x128xf32>
    %154 = arith.mulf %153, %14 : vector<1x128xf32>
    %155 = vector.shape_cast %154 : vector<1x128xf32> to vector<1x1x128xf32>
    %cst_22 = arith.constant dense<0.000000e+00> : vector<1xf32>
    %156 = vector.multi_reduction <add>, %155, %cst_22 [1, 2] : vector<1x1x128xf32> to vector<1xf32>
    %157 = vector.shape_cast %156 : vector<1xf32> to vector<1x1x1xf32>
    %158 = vector.extract %157[0, 0, 0] : f32 from vector<1x1x1xf32>
    %159 = vector.broadcast %158 : f32 to vector<1x1xf32>
    %160 = arith.mulf %159, %9 : vector<1x1xf32>
    %c0_23 = arith.constant 0 : index
    %c0_24 = arith.constant 0 : index
    %161 = vector.load %arg2[%c0_23, %c0_24] : memref<1x1xf32, #tpu.memory_space<vmem>>, vector<1x1xf32>
    tpu.vector_store %arg2[%c0_23, %c0_24], %160 {strides = array<i32>} : memref<1x1xf32, #tpu.memory_space<vmem>>, vector<1x1xf32>,
    return
  }
}

</mosaic_0001>

<bundles_post_ra>
// kernel: tpu_custom_call.1
= control target key start
LH: loop header
LB: loop body
LE: loop exit
PB: predicated region body
PF: predicated region fallthrough
CT: control target
= control target key end

     0   :  { %vm27_vm0 = vcmask 1040384   ;;  %s376_s0 = inlined_call_operand.<no memory space> [shape: s32[1], index: 0, kind: input, shape index: {}]   ;;  %s377_s1 = inlined_call_operand.vmem [shape: f32[2,128], index: 1, kind: input, shape index: {}]   ;;  %s378_s2 = inlined_call_operand.hbm [shape: f32[1,1], index: 2, kind: output, shape index: {}]  }
   0x1   :  { %v14_v0 = vld [vmem:[%s377_s1 + $0x1] sm:$0x1] }
   0x2   :  { %8 = vsyncpa [#allocation4], 0  ;;  %v28_v1 = vsel %vm27_vm0, %v14_v0, 0.0  ;;  %v16_v2 = vstv %s376_s0  ;;  %v22_v6 = vlaneseq  ;;  %v302_v12 = vmov 0.0   ;;  %v344_v29 = vld [vmem:[%s377_s1] sm:$0x1] }
   0x3   :  { %29 = vadd.xlane.f32.xlu0 %v28_v1  ;;  %v17_v3 = vcvt.s32.f32 %v16_v2  ;;  %vm66_vm5 = vcmask 1041408   ;;  %v63_v35 = vrot.slane %v344_v29, 4  ;;  %vm68_vm6 = vcmask 1042432   ;;  %s308_s1 = smov [#allocation3]   ;;  %s235_s17 = sshll.u32 %s378_s2, 4  ;;  %s236_s17 = int_to_ptr.hbm [resolvable:$true] %s235_s17 }
   0x4   :  { %v23_v8 = vand.u32 127, %v22_v6  ;;  %vm70_vm7 = vcmask 1043456   ;;  %vm72_vm8 = vcmask 1044480   ;;  %vm74_vm9 = vcmask 1045504   ;;  %s233_s14 = sshll.u32 %s308_s1, 4  ;;  %s234_s14 = int_to_ptr.vmem [resolvable:$true] %s233_s14 }
   0x5   :  { %264 = vrcp.f32 %v17_v3  ;;  %vm76_vm10 = vcmask 1046528   ;;  %v303_v42 = vmov 0   ;;  %v353_v43 = vshrl.u32 %v22_v6, 7 }
   0x6   :  { %vm24_vm1 = vcmp.lt.s32.totalorder %v23_v8, %v16_v2  ;;  %256 = vset.pattern.permute.xlu1 %v303_v42  ;;  %v80_v44 = vmul.f32 1e-06, %v17_v3  ;;  %v304_v53 = vmov 1   ;;  %v305_v2 = vmov 2  }
   0x7   :  { %v334_v13 = vsel %vm24_vm1, 1.0, %v302_v12  ;;  %vm81_vm11 = vcmp.eq.s32.totalorder %v353_v43, %v23_v8  ;;  %vm113_vm12 = vcmp.eq.s32.totalorder %v353_v43, 0  ;;  %257 = vset.pattern.permute.xlu2 %v304_v53  ;;  %vm134_vm13 = vcmp.eq.s32.totalorder %v353_v43, 1  ;;  %258 = vset.pattern.permute.xlu0 %v305_v2 }
   0x8   :  { %v82_v45 = vsel %vm81_vm11, %v80_v44, 0.0  ;;  %vm155_vm14 = vcmp.eq.s32.totalorder %v353_v43, 2  ;;  %vm176_vm15 = vcmp.eq.s32.totalorder %v353_v43, 3  ;;  %vm226_vm1 = vcmask 0  }
   0xb   :  { %v265_v4 = vpop.eup %264 }
   0xc   :  { %v19_v5 = vmul.f32 %v265_v4, %v17_v3 }
   0xe   :  { %v20_v7 = vsub.f32 2.0, %v19_v5 }
  0x10   :  { %v331_v9 = vmul.f32 %v265_v4, %v20_v7 }
  0x76   :  { %v30_v10 = vpop.xlane.xlu0 %29 }
  0x77   :  { %v31_v11 = vmul.f32 %v30_v10, %v331_v9 }
  0x79   :  { %v32_v14 = vsub.f32 %v14_v0, %v31_v11 }
  0x7b   :  { %v33_v15 = vmul.f32 %v334_v13, %v32_v14 }
  0x7d   :  { %v34_v16 = vmul.f32 %v33_v15, %v33_v15 }
  0x7f   :  { %v35_v17 = vsel %vm27_vm0, %v34_v16, 0.0 }
  0x80   :  { %36 = vadd.xlane.f32.xlu0 %v35_v17  ;;  %v306_v17 = vmov 3  }
  0xf3   :  { %v37_v18 = vpop.xlane.xlu0 %36 }
  0xf4   :  { %v38_v19 = vmul.f32 %v37_v18, %v331_v9 }
  0xf6   :  { %v39_v20 = vadd.f32 1e-12, %v38_v19 }
  0xf8   :  { %266 = vrsqrt.f32 %v39_v20  ;;  %vm46_vm3 = vweird.f32 %v39_v20 }
  0xfe   :  { %v267_v21 = vpop.eup %266 }
  0xff   :  { %v41_v22 = vmul.f32 %v267_v21, %v39_v20  ;;  %vm47_vm2 = vweird.f32 %v267_v21 }
 0x100   :  { %vm48_vm4 = vmor %vm46_vm3, %vm47_vm2 }
 0x101   :  { %v42_v23 = vmul.f32 %v267_v21, %v41_v22 }
 0x103   :  { %v43_v24 = vmul.f32 0.5, %v42_v23 }
 0x105   :  { %v44_v25 = vsub.f32 1.5, %v43_v24 }
 0x107   :  { %v45_v26 = vmul.f32 %v267_v21, %v44_v25 }
 0x109   :  { %v49_v27 = vsel %vm48_vm4, %v267_v21, %v45_v26 }
 0x10a   :  { %v339_v28 = vmul.f32 %v49_v27, %v33_v15 }
 0x10c   :  { %v51_v30 = vmul.f32 %v339_v28, %v339_v28  ;;  %v54_v31 = vrot.slane %v339_v28, 7 }
 0x10e   :  { %v52_v32 = vmul.f32 %v51_v30, %v339_v28  ;;  %v57_v33 = vrot.slane %v51_v30, 6  ;;  %v65_v34 = vsel %vm27_vm0, %v334_v13, %v54_v31 }
 0x110   :  { %v60_v36 = vrot.slane %v52_v32, 5  ;;  %v67_v37 = vsel %vm66_vm5, %v65_v34, %v57_v33  ;;  %v307_v32 = vmov 4  }
 0x112   :  { %v69_v38 = vsel %vm68_vm6, %v67_v37, %v60_v36 }
 0x113   :  { %v71_v39 = vsel %vm70_vm7, %v69_v38, %v63_v35 }
 0x114   :  { %v73_v40 = vsel %vm72_vm8, %v71_v39, 0.0 }
 0x115   :  { %v75_v41 = vsel %vm74_vm9, %v73_v40, 0.0  ;;  %v192_v40 = vrot.slane %v339_v28, 5 }
 0x116   :  { %245 = vmatpush.xpose.msk.msra.mxu0 %vm76_vm10, %v75_v41 }
 0x119   :  { %246 = vmatmul.msk.f32.vlgmr.msra.gmra.mxu0 %vm76_vm10, %v75_v41 }
 0x196   :  { %v100_v46 = vpop.f32.mrf.mxu0 }
 0x197   :  { %v101_v47 = vadd.f32 %v100_v46, %v82_v45 }
 0x199   :  { %268 = vrcp.f32 %v101_v47  ;;  %v114_v52 = vsel %vm113_vm12, 0.0, %v101_v47 }
 0x19f   :  { %v269_v48 = vpop.eup %268 }
 0x1a0   :  { %v104_v49 = vmul.f32 %v269_v48, %v101_v47 }
 0x1a2   :  { %v105_v50 = vsub.f32 2.0, %v104_v49 }
 0x1a4   :  { %v106_v51 = vmul.f32 %v269_v48, %v105_v50 }
 0x1a6   :  { %109 = vperm.xlu1 %256, %v106_v51   ;;  %v206_v51 = vrot.slane %v344_v29, 5 }
 0x1ae   :  { %117 = vperm.xlu1 %256, %v114_v52  }
 0x1b6   :  { %259 = vset.pattern.permute.xlu1 %v305_v2 }
 0x218   :  { %v110_v54 = vpop.permute.xlu1 %109 }
 0x219   :  { %v112_v55 = vmul.f32 %v110_v54, %v101_v47 }
 0x21b   :  { %v120_v56 = vperm.slane %v112_v55, 0 }
 0x220   :  { %v118_v57 = vpop.permute.xlu1 %117 }
 0x221   :  { %v121_v58 = vmul.f32 %v120_v56, %v118_v57 }
 0x223   :  { %v122_v59 = vsub.f32 %v101_v47, %v121_v58 }
 0x225   :  { %v123_v60 = vsel %vm113_vm12, %v120_v56, %v122_v59 }
 0x226   :  { %270 = vrcp.f32 %v123_v60  ;;  %v135_v1 = vsel %vm134_vm13, 0.0, %v123_v60 }
 0x22c   :  { %v271_v61 = vpop.eup %270 }
 0x22d   :  { %v125_v62 = vmul.f32 %v271_v61, %v123_v60 }
 0x22f   :  { %v126_v63 = vsub.f32 2.0, %v125_v62 }
 0x231   :  { %v127_v0 = vmul.f32 %v271_v61, %v126_v63 }
 0x233   :  { %130 = vperm.xlu2 %257, %v127_v0  }
 0x23b   :  { %138 = vperm.xlu2 %257, %v135_v1  }
 0x243   :  { %260 = vset.pattern.permute.xlu2 %v306_v17 }
 0x28d   :  { %v131_v3 = vpop.permute.xlu2 %130 }
 0x28e   :  { %v133_v4 = vmul.f32 %v131_v3, %v123_v60 }
 0x290   :  { %v141_v5 = vperm.slane %v133_v4, 1 }
 0x295   :  { %v139_v6 = vpop.permute.xlu2 %138 }
 0x296   :  { %v142_v7 = vmul.f32 %v141_v5, %v139_v6 }
 0x298   :  { %v143_v8 = vsub.f32 %v123_v60, %v142_v7 }
 0x29a   :  { %v144_v10 = vsel %vm134_vm13, %v141_v5, %v143_v8 }
 0x29b   :  { %v156_v11 = vsel %vm155_vm14, 0.0, %v144_v10  ;;  %272 = vrcp.f32 %v144_v10 }
 0x29c   :  { %159 = vperm.xlu1 %259, %v156_v11  }
 0x2a1   :  { %v273_v12 = vpop.eup %272 }
 0x2a2   :  { %v146_v14 = vmul.f32 %v273_v12, %v144_v10 }
 0x2a4   :  { %v147_v15 = vsub.f32 2.0, %v146_v14  ;;  %261 = vset.pattern.permute.xlu1 %v306_v17 }
 0x2a6   :  { %v148_v16 = vmul.f32 %v273_v12, %v147_v15 }
 0x2a8   :  { %151 = vperm.xlu0 %258, %v148_v16  }
 0x2b0   :  { %263 = vset.pattern.permute.xlu0 %v307_v32 }
 0x30e   :  { %v160_v21 = vpop.permute.xlu1 %159 }
 0x31a   :  { %v152_v18 = vpop.permute.xlu0 %151 }
 0x31b   :  { %v154_v19 = vmul.f32 %v152_v18, %v144_v10 }
 0x31d   :  { %v162_v20 = vperm.slane %v154_v19, 2 }
 0x31f   :  { %v163_v22 = vmul.f32 %v162_v20, %v160_v21 }
 0x321   :  { %v164_v23 = vsub.f32 %v144_v10, %v163_v22 }
 0x323   :  { %v165_v24 = vsel %vm155_vm14, %v162_v20, %v164_v23 }
 0x324   :  { %v177_v25 = vsel %vm176_vm15, 0.0, %v165_v24  ;;  %274 = vrcp.f32 %v165_v24 }
 0x325   :  { %180 = vperm.xlu1 %261, %v177_v25  }
 0x32a   :  { %v275_v26 = vpop.eup %274 }
 0x32b   :  { %v167_v27 = vmul.f32 %v275_v26, %v165_v24 }
 0x32d   :  { %v168_v30 = vsub.f32 2.0, %v167_v27 }
 0x32f   :  { %v169_v31 = vmul.f32 %v275_v26, %v168_v30 }
 0x331   :  { %172 = vperm.xlu2 %260, %v169_v31  }
 0x339   :  { %262 = vset.pattern.permute.xlu2 %v307_v32 }
 0x38b   :  { %v173_v33 = vpop.permute.xlu2 %172 }
 0x38c   :  { %v175_v34 = vmul.f32 %v173_v33, %v165_v24 }
 0x38e   :  { %v183_v35 = vperm.slane %v175_v34, 3 }
 0x397   :  { %v181_v36 = vpop.permute.xlu1 %180 }
 0x398   :  { %v184_v37 = vmul.f32 %v183_v35, %v181_v36 }
 0x39a   :  { %v185_v38 = vsub.f32 %v165_v24, %v184_v37 }
 0x39c   :  { %v186_v39 = vsel %vm176_vm15, %v183_v35, %v185_v38 }
 0x39d   :  { %189 = vperm.xlu2 %262, %v186_v39  }
 0x3f7   :  { %v190_v41 = vpop.permute.xlu2 %189 }
 0x3f8   :  { %v194_v42 = vmul.f32 %v192_v40, %v190_v41  ;;  %v195_v44 = vrot.slane %v190_v41, 7  ;;  %v199_v47 = vrot.slane %v190_v41, 6  ;;  %v203_v50 = vrot.slane %v190_v41, 5 }
 0x3fa   :  { %v197_v45 = vadd.f32 %v195_v44, %v194_v42 }
 0x3fc   :  { %v198_v46 = vmul.f32 %v197_v45, %v192_v40 }
 0x3fe   :  { %v201_v48 = vadd.f32 %v199_v47, %v198_v46 }
 0x400   :  { %v202_v49 = vmul.f32 %v201_v48, %v192_v40 }
 0x402   :  { %v205_v52 = vadd.f32 %v203_v50, %v202_v49 }
 0x404   :  { %v208_v53 = vsub.f32 %v205_v52, %v206_v51 }
 0x406   :  { %v209_v54 = vand.u32 2147483647, %v208_v53 }
 0x408   :  { %v210_v43 = vmul.f32 %v334_v13, %v209_v54 }
 0x40a   :  { %v212_v55 = vrot.slane %v210_v43, 3 }
 0x40c   :  { %v214_v56 = vsel %vm27_vm0, %v212_v55, 0.0 }
 0x40d   :  { %215 = vadd.xlane.f32.xlu1 %v214_v56 }
 0x480   :  { %v216_v28 = vpop.xlane.xlu1 %215 }
 0x481   :  { %v217_v57 = vrot.slane %v216_v28, 4 }
 0x483   :  { %v218_v58 = vadd.f32 %v217_v57, %v216_v28 }
 0x485   :  { %v219_v59 = vrot.slane %v218_v58, 2 }
 0x487   :  { %v220_v60 = vadd.f32 %v219_v59, %v218_v58 }
 0x489   :  { %v221_v61 = vrot.slane %v220_v60, 1 }
 0x48b   :  { %v222_v62 = vadd.f32 %v221_v61, %v220_v60 }
 0x48d   :  { %247 = vpush %v222_v62 }
 0x4be   :  { %s248_s18 = spop %247 }
 0x4bf   :  { %v224_v13 = vstv %s248_s18 }
 0x4c0   :  { %v225_v29 = vmul.f32 %v224_v13, %v331_v9 }
 0x4c2   :  { %227 = vst.msk [vmem:[#allocation3] sm:$0x1] %vm226_vm1, %v225_v29 }
 0x4c3   :  { %238 = dma.vmem_to_hbm [thread:$0]  %s234_s14, 16, %s236_s17, [#allocation4]  }
 0x4c4   :  { %300 = dma.done.wait [#allocation4], 16  }
 0x4c5   :  { %301 = vsyncadd [#allocation4], 4294967280 }
 0x4c6   :  { %243 = vsyncpa [#allocation4], 1 }

</bundles_post_ra>
